<compile_context>
chip_gen: v5e
topology: v5e:2x2
jax: 0.10.0
libtpu: 0.0.40
codegen_flags: <defaults>
</compile_context>

<pallas_src>
import functools

import numpy as np

import jax
import jax.numpy as jnp
from jax.experimental import pallas as pl
from jax.experimental.pallas import tpu as pltpu


# ----------------------------------------------------------------------------
# Tiling helper
# ----------------------------------------------------------------------------
def _pick_tile_rows(H, W, max_tile_bytes=1 << 20, elem_bytes=4):
    """Largest row-tile TH that (a) divides H, (b) is a multiple of 8 (or == H),
    and (c) keeps one (TH, W) f32 tile under `max_tile_bytes`."""
    max_rows = max(8, max_tile_bytes // (W * elem_bytes))
    if H <= max_rows:
        return H
    th = (max_rows // 8) * 8
    while th >= 8:
        if H % th == 0:
            return th
        th -= 8
    # TODO(synk): no multiple-of-8 divisor of H fits the VMEM budget; fall
    # back to the full height (rare for real CRAFT map sizes).
    return H


# ----------------------------------------------------------------------------
# Pallas kernel: per-tile squared error * mask, pos/neg split, partial stats
# ----------------------------------------------------------------------------
def _maploss_kernel(r_label_ref, a_label_ref, r_pre_ref, a_pre_ref, mask_ref,
                    r_neg_ref, a_neg_ref, stats_ref,
                    acc_rs, acc_rc, acc_as, acc_ac):
    s = pl.program_id(1)                       # spatial (accumulation) axis

    @pl.when(s == 0)
    def _init():
        acc_rs[...] = jnp.zeros_like(acc_rs)
        acc_rc[...] = jnp.zeros_like(acc_rc)
        acc_as[...] = jnp.zeros_like(acc_as)
        acc_ac[...] = jnp.zeros_like(acc_ac)

    r_label = r_label_ref[...].astype(jnp.float32)      # (TH, W)
    a_label = a_label_ref[...].astype(jnp.float32)
    mask = mask_ref[...].astype(jnp.float32)

    # MSELoss(reduce=False) -> per-element squared error, then * mask
    dr = r_pre_ref[...].astype(jnp.float32) - r_label
    da = a_pre_ref[...].astype(jnp.float32) - a_label
    loss_r = dr * dr * mask
    loss_a = da * da * mask

    # positive / negative pixel masks from the *labels*
    r_pos = (r_label > 0.1).astype(jnp.float32)
    a_pos = (a_label > 0.1).astype(jnp.float32)

    # negative-loss maps (needed outside the kernel for OHEM top-k mining)
    neg_r = loss_r * (1.0 - r_pos)
    neg_a = loss_a * (1.0 - a_pos)
    r_neg_ref[...] = neg_r.astype(r_neg_ref.dtype)
    a_neg_ref[...] = neg_a.astype(a_neg_ref.dtype)

    # Sublane-only partial reductions (lane vector kept); the lane reduction
    # is deferred to the per-batch finalize step.  loss_r - neg_r == loss_r * r_pos
    # exactly (neg_r is either 0 or loss_r elementwise).
    acc_rs[...] += jnp.sum(loss_r - neg_r, axis=0, keepdims=True)
    acc_rc[...] += jnp.sum(r_pos, axis=0, keepdims=True)
    acc_as[...] += jnp.sum(loss_a - neg_a, axis=0, keepdims=True)
    acc_ac[...] += jnp.sum(a_pos, axis=0, keepdims=True)

    @pl.when(s == pl.num_programs(1) - 1)
    def _finalize():
        def lane_sum(acc):
            return jnp.broadcast_to(
                jnp.sum(acc[...], axis=1, keepdims=True), (4, 128))

        row = jax.lax.broadcasted_iota(jnp.int32, (4, 128), 0)
        out = jnp.where(row == 0, lane_sum(acc_rs),
              jnp.where(row == 1, lane_sum(acc_rc),
              jnp.where(row == 2, lane_sum(acc_as), lane_sum(acc_ac))))
        stats_ref[...] = out.astype(stats_ref.dtype)


def _run_maploss_kernel(r_label, a_label, r_pre, a_pre, mask):
    B, H, W = r_label.shape
    TH = _pick_tile_rows(H, W)
    S = H // TH
    grid = (B, S)

    map_in_spec = pl.BlockSpec((None, TH, W), lambda b, s: (b, s, 0))
    map_out_spec = pl.BlockSpec((None, TH, W), lambda b, s: (b, s, 0))
    stat_spec = pl.BlockSpec((None, 4, 128), lambda b, s: (b, 0, 0))

    out_shape = (
        jax.ShapeDtypeStruct((B, H, W), jnp.float32),     # region neg-loss map
        jax.ShapeDtypeStruct((B, H, W), jnp.float32),     # affinity neg-loss map
        jax.ShapeDtypeStruct((B, 4, 128), jnp.float32),   # per-batch stats block
    )

    return pl.pallas_call(
        _maploss_kernel,
        out_shape=out_shape,
        grid=grid,
        in_specs=[map_in_spec] * 5,
        out_specs=(map_out_spec, map_out_spec, stat_spec),
        scratch_shapes=[pltpu.VMEM((1, W), jnp.float32) for _ in range(4)],
        compiler_params=pltpu.CompilerParams(
            dimension_semantics=("parallel", "arbitrary"),
            vmem_limit_bytes=32 * 1024 * 1024),
    )(r_label, a_label, r_pre, a_pre, mask)


# ----------------------------------------------------------------------------
# Glue: batch_image_loss branch logic + bounded top-k (OHEM)
# ----------------------------------------------------------------------------
def _batch_image_loss(neg_loss_map, pos_sum, pos_cnt, neg_cnt,
                      neg_rto, n_min_neg, k_max):
    flat = neg_loss_map.reshape(-1)
    topv = jax.lax.top_k(flat, k_max)[0]           # descending values
    csum = jnp.cumsum(topv)

    # torch: int(neg_rto * positive_pixel_number)  (floor for positive values)
    k_dyn = jnp.floor(neg_rto * pos_cnt).astype(jnp.int32)
    use_min = jnp.logical_or(pos_cnt == 0.0, neg_cnt < neg_rto * pos_cnt)
    k = jnp.where(use_min, jnp.int32(n_min_neg), k_dyn)
    # TODO(synk): if a user-supplied k_cap < B*H*W and the dynamic k exceeds
    # it, k is clipped (slight deviation from torch.topk); the default
    # k_cap=None keeps exact semantics.
    k = jnp.clip(k, 0, k_max)

    denom = jnp.where(use_min, jnp.float32(n_min_neg), pos_cnt * neg_rto)
    topk_sum = jnp.where(k > 0, csum[jnp.maximum(k - 1, 0)], 0.0)
    negative_loss = topk_sum / denom

    positive_loss = jnp.where(
        pos_cnt != 0.0,
        pos_sum / jnp.where(pos_cnt != 0.0, pos_cnt, 1.0),
        0.0)
    return positive_loss + negative_loss


@functools.partial(jax.jit, static_argnums=(5, 6, 7))
def maploss_v2(region_scores_label, affinity_scores_label,
               region_scores_pre, affinity_scores_pre,
               mask, neg_rto, n_min_neg, k_cap=None):
    assert region_scores_label.shape == region_scores_pre.shape
    assert affinity_scores_label.shape == affinity_scores_pre.shape

    if mask.dtype == jnp.bool_:
        mask = mask.astype(jnp.float32)

    B, H, W = region_scores_label.shape
    n_total = B * H * W
    k_max = n_total if k_cap is None else min(int(k_cap), n_total)
    k_max = max(k_max, min(int(n_min_neg), n_total))

    r_neg_map, a_neg_map, stats = _run_maploss_kernel(
        region_scores_label, affinity_scores_label,
        region_scores_pre, affinity_scores_pre, mask)

    r_pos_sum = jnp.sum(stats[:, 0, 0])
    r_pos_cnt = jnp.sum(stats[:, 1, 0])
    a_pos_sum = jnp.sum(stats[:, 2, 0])
    a_pos_cnt = jnp.sum(stats[:, 3, 0])
    r_neg_cnt = jnp.float32(n_total) - r_pos_cnt
    a_neg_cnt = jnp.float32(n_total) - a_pos_cnt

    char_loss = _batch_image_loss(r_neg_map, r_pos_sum, r_pos_cnt, r_neg_cnt,
                                  neg_rto, n_min_neg, k_max)
    affi_loss = _batch_image_loss(a_neg_map, a_pos_sum, a_pos_cnt, a_neg_cnt,
                                  neg_rto, n_min_neg, k_max)
    return char_loss + affi_loss


# ----------------------------------------------------------------------------
# Pure numpy reference mirroring the PyTorch module exactly (for validation)
# ----------------------------------------------------------------------------
def _numpy_ref(r_lab, a_lab, r_pre, a_pre, mask, neg_rto, n_min_neg):
    def batch_image_loss(pred_loss, lab):
        pos = (lab > 0.1).astype(np.float32)
        neg = (lab <= 0.1).astype(np.float32)
        pos_n = pos.sum()
        neg_n = neg.sum()
        pos_loss = pred_loss * pos
        neg_loss = pred_loss * neg
        flat = np.sort(neg_loss.reshape(-1))[::-1]
        if pos_n != 0:
            if neg_n < neg_rto * pos_n:
                negative_loss = flat[:n_min_neg].sum() / n_min_neg
            else:
                k = int(neg_rto * pos_n)
                negative_loss = flat[:k].sum() / (pos_n * neg_rto)
            positive_loss = pos_loss.sum() / pos_n
        else:
            negative_loss = flat[:n_min_neg].sum() / n_min_neg
            positive_loss = 0.0
        return positive_loss + negative_loss

    l1 = (r_pre - r_lab) ** 2 * mask
    l2 = (a_pre - a_lab) ** 2 * mask
    return batch_image_loss(l1, r_lab) + batch_image_loss(l2, a_lab)


if __name__ == "__main__":
    key = jax.random.PRNGKey(0)
    B, H, W = 2, 16, 16
    k1, k2, k3, k4, k5 = jax.random.split(key, 5)

    # Labels mostly low-valued with some positive regions, like CRAFT heatmaps
    region_scores_label = jax.random.uniform(k1, (B, H, W), jnp.float32) * 0.3
    affinity_scores_label = jax.random.uniform(k2, (B, H, W), jnp.float32) * 0.3
    region_scores_pre = jax.random.uniform(k3, (B, H, W), jnp.float32)
    affinity_scores_pre = jax.random.uniform(k4, (B, H, W), jnp.float32)
    mask = (jax.random.uniform(k5, (B, H, W), jnp.float32) > 0.2).astype(jnp.float32)

    neg_rto = 3.0
    n_min_neg = 64     # <= B*H*W = 512
    k_cap = 128        # bounded OHEM top-k (>= n_min_neg; exact for this data)

    loss = maploss_v2(region_scores_label, affinity_scores_label,
                      region_scores_pre, affinity_scores_pre,
                      mask, neg_rto, n_min_neg, k_cap)
    loss = jax.block_until_ready(loss)

    ref = _numpy_ref(np.asarray(region_scores_label),
                     np.asarray(affinity_scores_label),
                     np.asarray(region_scores_pre),
                     np.asarray(affinity_scores_pre),
                     np.asarray(mask), neg_rto, n_min_neg)
    assert np.allclose(np.asarray(loss), ref, rtol=1e-4, atol=1e-5), (loss, ref)

    print("KERNEL_OK")
</pallas_src>

<mosaic_0001>
module attributes {stable_mosaic.version = 11 : i64} {
  func.func @_maploss_kernel(%arg0: i32, %arg1: i32, %arg2: memref<1x16x16xf32, #tpu.memory_space<vmem>>, %arg3: memref<1x16x16xf32, #tpu.memory_space<vmem>>, %arg4: memref<1x16x16xf32, #tpu.memory_space<vmem>>, %arg5: memref<1x16x16xf32, #tpu.memory_space<vmem>>, %arg6: memref<1x16x16xf32, #tpu.memory_space<vmem>>, %arg7: memref<1x16x16xf32, #tpu.memory_space<vmem>>, %arg8: memref<1x16x16xf32, #tpu.memory_space<vmem>>, %arg9: memref<1x4x128xf32, #tpu.memory_space<vmem>>, %arg10: memref<1x16xf32, #tpu.memory_space<vmem>>, %arg11: memref<1x16xf32, #tpu.memory_space<vmem>>, %arg12: memref<1x16xf32, #tpu.memory_space<vmem>>, %arg13: memref<1x16xf32, #tpu.memory_space<vmem>>) attributes {dimension_semantics = [#tpu.dimension_semantics<parallel>, #tpu.dimension_semantics<arbitrary>], iteration_bounds = array<i64: 2, 1>, scalar_prefetch = 0 : i64, scratch_operands = 4 : i64, tpu.core_type = #tpu.core_type<tc>, window_params = [{transform_indices = @transform_0, window_bounds = array<i64: 1, 16, 16>}, {transform_indices = @transform_1, window_bounds = array<i64: 1, 16, 16>}, {transform_indices = @transform_2, window_bounds = array<i64: 1, 16, 16>}, {transform_indices = @transform_3, window_bounds = array<i64: 1, 16, 16>}, {transform_indices = @transform_4, window_bounds = array<i64: 1, 16, 16>}, {transform_indices = @transform_5, window_bounds = array<i64: 1, 16, 16>}, {transform_indices = @transform_6, window_bounds = array<i64: 1, 16, 16>}, {transform_indices = @transform_7, window_bounds = array<i64: 1, 4, 128>}]} {
    %c0_i32 = arith.constant 0 : i32
    %0 = arith.cmpi eq, %arg1, %c0_i32 : i32
    %1 = arith.extui %0 : i1 to i32
    %c0_i32_0 = arith.constant 0 : i32
    %2 = arith.cmpi ne, %1, %c0_i32_0 : i32
    scf.if %2 {
      %cst_46 = arith.constant 0.000000e+00 : f32
      %64 = vector.broadcast %cst_46 : f32 to vector<1x16xf32>
      %c0_47 = arith.constant 0 : index
      %c0_48 = arith.constant 0 : index
      %65 = vector.load %arg10[%c0_47, %c0_48] : memref<1x16xf32, #tpu.memory_space<vmem>>, vector<1x16xf32>
      tpu.vector_store %arg10[%c0_47, %c0_48], %64 {strides = array<i32>} : memref<1x16xf32, #tpu.memory_space<vmem>>, vector<1x16xf32>,
      %cst_49 = arith.constant 0.000000e+00 : f32
      %66 = vector.broadcast %cst_49 : f32 to vector<1x16xf32>
      %c0_50 = arith.constant 0 : index
      %c0_51 = arith.constant 0 : index
      %67 = vector.load %arg11[%c0_50, %c0_51] : memref<1x16xf32, #tpu.memory_space<vmem>>, vector<1x16xf32>
      tpu.vector_store %arg11[%c0_50, %c0_51], %66 {strides = array<i32>} : memref<1x16xf32, #tpu.memory_space<vmem>>, vector<1x16xf32>,
      %cst_52 = arith.constant 0.000000e+00 : f32
      %68 = vector.broadcast %cst_52 : f32 to vector<1x16xf32>
      %c0_53 = arith.constant 0 : index
      %c0_54 = arith.constant 0 : index
      %69 = vector.load %arg12[%c0_53, %c0_54] : memref<1x16xf32, #tpu.memory_space<vmem>>, vector<1x16xf32>
      tpu.vector_store %arg12[%c0_53, %c0_54], %68 {strides = array<i32>} : memref<1x16xf32, #tpu.memory_space<vmem>>, vector<1x16xf32>,
      %cst_55 = arith.constant 0.000000e+00 : f32
      %70 = vector.broadcast %cst_55 : f32 to vector<1x16xf32>
      %c0_56 = arith.constant 0 : index
      %c0_57 = arith.constant 0 : index
      %71 = vector.load %arg13[%c0_56, %c0_57] : memref<1x16xf32, #tpu.memory_space<vmem>>, vector<1x16xf32>
      tpu.vector_store %arg13[%c0_56, %c0_57], %70 {strides = array<i32>} : memref<1x16xf32, #tpu.memory_space<vmem>>, vector<1x16xf32>,
    } else {
    }
    %c0 = arith.constant 0 : index
    %c0_1 = arith.constant 0 : index
    %c0_2 = arith.constant 0 : index
    %3 = vector.load %arg2[%c0, %c0_1, %c0_2] : memref<1x16x16xf32, #tpu.memory_space<vmem>>, vector<1x16x16xf32>
    %4 = vector.shape_cast %3 : vector<1x16x16xf32> to vector<16x16xf32>
    %c0_3 = arith.constant 0 : index
    %c0_4 = arith.constant 0 : index
    %c0_5 = arith.constant 0 : index
    %5 = vector.load %arg3[%c0_3, %c0_4, %c0_5] : memref<1x16x16xf32, #tpu.memory_space<vmem>>, vector<1x16x16xf32>
    %6 = vector.shape_cast %5 : vector<1x16x16xf32> to vector<16x16xf32>
    %c0_6 = arith.constant 0 : index
    %c0_7 = arith.constant 0 : index
    %c0_8 = arith.constant 0 : index
    %7 = vector.load %arg6[%c0_6, %c0_7, %c0_8] : memref<1x16x16xf32, #tpu.memory_space<vmem>>, vector<1x16x16xf32>
    %8 = vector.shape_cast %7 : vector<1x16x16xf32> to vector<16x16xf32>
    %c0_9 = arith.constant 0 : index
    %c0_10 = arith.constant 0 : index
    %c0_11 = arith.constant 0 : index
    %9 = vector.load %arg4[%c0_9, %c0_10, %c0_11] : memref<1x16x16xf32, #tpu.memory_space<vmem>>, vector<1x16x16xf32>
    %10 = vector.shape_cast %9 : vector<1x16x16xf32> to vector<16x16xf32>
    %11 = arith.subf %10, %4 : vector<16x16xf32>
    %c0_12 = arith.constant 0 : index
    %c0_13 = arith.constant 0 : index
    %c0_14 = arith.constant 0 : index
    %12 = vector.load %arg5[%c0_12, %c0_13, %c0_14] : memref<1x16x16xf32, #tpu.memory_space<vmem>>, vector<1x16x16xf32>
    %13 = vector.shape_cast %12 : vector<1x16x16xf32> to vector<16x16xf32>
    %14 = arith.subf %13, %6 : vector<16x16xf32>
    %15 = arith.mulf %11, %11 : vector<16x16xf32>
    %16 = arith.mulf %15, %8 : vector<16x16xf32>
    %17 = arith.mulf %14, %14 : vector<16x16xf32>
    %18 = arith.mulf %17, %8 : vector<16x16xf32>
    %cst = arith.constant 1.000000e-01 : f32
    %19 = vector.broadcast %cst : f32 to vector<16x16xf32>
    %20 = arith.cmpf ogt, %4, %19 : vector<16x16xf32>
    %21 = arith.extui %20 : vector<16x16xi1> to vector<16x16xi32>
    %22 = arith.sitofp %21 : vector<16x16xi32> to vector<16x16xf32>
    %cst_15 = arith.constant 1.000000e-01 : f32
    %23 = vector.broadcast %cst_15 : f32 to vector<16x16xf32>
    %24 = arith.cmpf ogt, %6, %23 : vector<16x16xf32>
    %25 = arith.extui %24 : vector<16x16xi1> to vector<16x16xi32>
    %26 = arith.sitofp %25 : vector<16x16xi32> to vector<16x16xf32>
    %cst_16 = arith.constant 1.000000e+00 : f32
    %27 = vector.broadcast %cst_16 : f32 to vector<16x16xf32>
    %28 = arith.subf %27, %22 : vector<16x16xf32>
    %29 = arith.mulf %16, %28 : vector<16x16xf32>
    %cst_17 = arith.constant 1.000000e+00 : f32
    %30 = vector.broadcast %cst_17 : f32 to vector<16x16xf32>
    %31 = arith.subf %30, %26 : vector<16x16xf32>
    %32 = arith.mulf %18, %31 : vector<16x16xf32>
    %c0_18 = arith.constant 0 : index
    %c0_19 = arith.constant 0 : index
    %c0_20 = arith.constant 0 : index
    %33 = vector.load %arg7[%c0_18, %c0_19, %c0_20] : memref<1x16x16xf32, #tpu.memory_space<vmem>>, vector<1x16x16xf32>
    %34 = vector.shape_cast %33 : vector<1x16x16xf32> to vector<16x16xf32>
    %35 = vector.shape_cast %29 : vector<16x16xf32> to vector<1x16x16xf32>
    tpu.vector_store %arg7[%c0_18, %c0_19, %c0_20], %35 {strides = array<i32>} : memref<1x16x16xf32, #tpu.memory_space<vmem>>, vector<1x16x16xf32>,
    %c0_21 = arith.constant 0 : index
    %c0_22 = arith.constant 0 : index
    %c0_23 = arith.constant 0 : index
    %36 = vector.load %arg8[%c0_21, %c0_22, %c0_23] : memref<1x16x16xf32, #tpu.memory_space<vmem>>, vector<1x16x16xf32>
    %37 = vector.shape_cast %36 : vector<1x16x16xf32> to vector<16x16xf32>
    %38 = vector.shape_cast %32 : vector<16x16xf32> to vector<1x16x16xf32>
    tpu.vector_store %arg8[%c0_21, %c0_22, %c0_23], %38 {strides = array<i32>} : memref<1x16x16xf32, #tpu.memory_space<vmem>>, vector<1x16x16xf32>,
    %c0_24 = arith.constant 0 : index
    %c0_25 = arith.constant 0 : index
    %39 = vector.load %arg10[%c0_24, %c0_25] : memref<1x16xf32, #tpu.memory_space<vmem>>, vector<1x16xf32>
    %40 = arith.subf %16, %29 : vector<16x16xf32>
    %cst_26 = arith.constant dense<0.000000e+00> : vector<16xf32>
    %41 = vector.multi_reduction <add>, %40, %cst_26 [0] : vector<16x16xf32> to vector<16xf32>
    %42 = vector.shape_cast %41 : vector<16xf32> to vector<1x16xf32>
    %43 = arith.addf %39, %42 : vector<1x16xf32>
    %c0_27 = arith.constant 0 : index
    %c0_28 = arith.constant 0 : index
    %44 = vector.load %arg10[%c0_27, %c0_28] : memref<1x16xf32, #tpu.memory_space<vmem>>, vector<1x16xf32>
    tpu.vector_store %arg10[%c0_27, %c0_28], %43 {strides = array<i32>} : memref<1x16xf32, #tpu.memory_space<vmem>>, vector<1x16xf32>,
    %c0_29 = arith.constant 0 : index
    %c0_30 = arith.constant 0 : index
    %45 = vector.load %arg11[%c0_29, %c0_30] : memref<1x16xf32, #tpu.memory_space<vmem>>, vector<1x16xf32>
    %cst_31 = arith.constant dense<0.000000e+00> : vector<16xf32>
    %46 = vector.multi_reduction <add>, %22, %cst_31 [0] : vector<16x16xf32> to vector<16xf32>
    %47 = vector.shape_cast %46 : vector<16xf32> to vector<1x16xf32>
    %48 = arith.addf %45, %47 : vector<1x16xf32>
    %c0_32 = arith.constant 0 : index
    %c0_33 = arith.constant 0 : index
    %49 = vector.load %arg11[%c0_32, %c0_33] : memref<1x16xf32, #tpu.memory_space<vmem>>, vector<1x16xf32>
    tpu.vector_store %arg11[%c0_32, %c0_33], %48 {strides = array<i32>} : memref<1x16xf32, #tpu.memory_space<vmem>>, vector<1x16xf32>,
    %c0_34 = arith.constant 0 : index
    %c0_35 = arith.constant 0 : index
    %50 = vector.load %arg12[%c0_34, %c0_35] : memref<1x16xf32, #tpu.memory_space<vmem>>, vector<1x16xf32>
    %51 = arith.subf %18, %32 : vector<16x16xf32>
    %cst_36 = arith.constant dense<0.000000e+00> : vector<16xf32>
    %52 = vector.multi_reduction <add>, %51, %cst_36 [0] : vector<16x16xf32> to vector<16xf32>
    %53 = vector.shape_cast %52 : vector<16xf32> to vector<1x16xf32>
    %54 = arith.addf %50, %53 : vector<1x16xf32>
    %c0_37 = arith.constant 0 : index
    %c0_38 = arith.constant 0 : index
    %55 = vector.load %arg12[%c0_37, %c0_38] : memref<1x16xf32, #tpu.memory_space<vmem>>, vector<1x16xf32>
    tpu.vector_store %arg12[%c0_37, %c0_38], %54 {strides = array<i32>} : memref<1x16xf32, #tpu.memory_space<vmem>>, vector<1x16xf32>,
    %c0_39 = arith.constant 0 : index
    %c0_40 = arith.constant 0 : index
    %56 = vector.load %arg13[%c0_39, %c0_40] : memref<1x16xf32, #tpu.memory_space<vmem>>, vector<1x16xf32>
    %cst_41 = arith.constant dense<0.000000e+00> : vector<16xf32>
    %57 = vector.multi_reduction <add>, %26, %cst_41 [0] : vector<16x16xf32> to vector<16xf32>
    %58 = vector.shape_cast %57 : vector<16xf32> to vector<1x16xf32>
    %59 = arith.addf %56, %58 : vector<1x16xf32>
    %c0_42 = arith.constant 0 : index
    %c0_43 = arith.constant 0 : index
    %60 = vector.load %arg13[%c0_42, %c0_43] : memref<1x16xf32, #tpu.memory_space<vmem>>, vector<1x16xf32>
    tpu.vector_store %arg13[%c0_42, %c0_43], %59 {strides = array<i32>} : memref<1x16xf32, #tpu.memory_space<vmem>>, vector<1x16xf32>,
    %c0_i32_44 = arith.constant 0 : i32
    %61 = arith.cmpi eq, %arg1, %c0_i32_44 : i32
    %62 = arith.extui %61 : i1 to i32
    %c0_i32_45 = arith.constant 0 : i32
    %63 = arith.cmpi ne, %62, %c0_i32_45 : i32
    scf.if %63 {
      %64 = tpu.iota {dimensions = array<i32: 0>} : vector<4x128xi32>
      %c0_i32_46 = arith.constant 0 : i32
      %65 = vector.broadcast %c0_i32_46 : i32 to vector<4x128xi32>
      %66 = arith.cmpi eq, %64, %65 : vector<4x128xi32>
      %c0_47 = arith.constant 0 : index
      %c0_48 = arith.constant 0 : index
      %67 = vector.load %arg10[%c0_47, %c0_48] : memref<1x16xf32, #tpu.memory_space<vmem>>, vector<1x16xf32>
      %cst_49 = arith.constant dense<0.000000e+00> : vector<1xf32>
      %68 = vector.multi_reduction <add>, %67, %cst_49 [1] : vector<1x16xf32> to vector<1xf32>
      %69 = vector.shape_cast %68 : vector<1xf32> to vector<1x1xf32>
      %70 = vector.shape_cast %69 : vector<1x1xf32> to vector<1x1xf32>
      %71 = vector.broadcast %70 : vector<1x1xf32> to vector<4x128xf32>
      %c1_i32 = arith.constant 1 : i32
      %72 = vector.broadcast %c1_i32 : i32 to vector<4x128xi32>
      %73 = arith.cmpi eq, %64, %72 : vector<4x128xi32>
      %c0_50 = arith.constant 0 : index
      %c0_51 = arith.constant 0 : index
      %74 = vector.load %arg11[%c0_50, %c0_51] : memref<1x16xf32, #tpu.memory_space<vmem>>, vector<1x16xf32>
      %cst_52 = arith.constant dense<0.000000e+00> : vector<1xf32>
      %75 = vector.multi_reduction <add>, %74, %cst_52 [1] : vector<1x16xf32> to vector<1xf32>
      %76 = vector.shape_cast %75 : vector<1xf32> to vector<1x1xf32>
      %77 = vector.shape_cast %76 : vector<1x1xf32> to vector<1x1xf32>
      %78 = vector.broadcast %77 : vector<1x1xf32> to vector<4x128xf32>
      %c2_i32 = arith.constant 2 : i32
      %79 = vector.broadcast %c2_i32 : i32 to vector<4x128xi32>
      %80 = arith.cmpi eq, %64, %79 : vector<4x128xi32>
      %c0_53 = arith.constant 0 : index
      %c0_54 = arith.constant 0 : index
      %81 = vector.load %arg12[%c0_53, %c0_54] : memref<1x16xf32, #tpu.memory_space<vmem>>, vector<1x16xf32>
      %cst_55 = arith.constant dense<0.000000e+00> : vector<1xf32>
      %82 = vector.multi_reduction <add>, %81, %cst_55 [1] : vector<1x16xf32> to vector<1xf32>
      %83 = vector.shape_cast %82 : vector<1xf32> to vector<1x1xf32>
      %84 = vector.shape_cast %83 : vector<1x1xf32> to vector<1x1xf32>
      %85 = vector.broadcast %84 : vector<1x1xf32> to vector<4x128xf32>
      %c0_56 = arith.constant 0 : index
      %c0_57 = arith.constant 0 : index
      %86 = vector.load %arg13[%c0_56, %c0_57] : memref<1x16xf32, #tpu.memory_space<vmem>>, vector<1x16xf32>
      %cst_58 = arith.constant dense<0.000000e+00> : vector<1xf32>
      %87 = vector.multi_reduction <add>, %86, %cst_58 [1] : vector<1x16xf32> to vector<1xf32>
      %88 = vector.shape_cast %87 : vector<1xf32> to vector<1x1xf32>
      %89 = vector.shape_cast %88 : vector<1x1xf32> to vector<1x1xf32>
      %90 = vector.broadcast %89 : vector<1x1xf32> to vector<4x128xf32>
      %91 = arith.select %80, %85, %90 : vector<4x128xi1>, vector<4x128xf32>
      %92 = arith.select %73, %78, %91 : vector<4x128xi1>, vector<4x128xf32>
      %93 = arith.select %66, %71, %92 : vector<4x128xi1>, vector<4x128xf32>
      %c0_59 = arith.constant 0 : index
      %c0_60 = arith.constant 0 : index
      %c0_61 = arith.constant 0 : index
      %94 = vector.load %arg9[%c0_59, %c0_60, %c0_61] : memref<1x4x128xf32, #tpu.memory_space<vmem>>, vector<1x4x128xf32>
      %95 = vector.shape_cast %94 : vector<1x4x128xf32> to vector<4x128xf32>
      %96 = vector.shape_cast %93 : vector<4x128xf32> to vector<1x4x128xf32>
      tpu.vector_store %arg9[%c0_59, %c0_60, %c0_61], %96 {strides = array<i32>} : memref<1x4x128xf32, #tpu.memory_space<vmem>>, vector<1x4x128xf32>,
    } else {
    }
    return
  }
  func.func @transform_0(%arg0: i32, %arg1: i32) -> (i32, i32, i32) {
    %c0_i32 = arith.constant 0 : i32
    %c0_i32_0 = arith.constant 0 : i32
    return %arg0, %arg1, %c0_i32 : i32, i32, i32
  }
  func.func @transform_1(%arg0: i32, %arg1: i32) -> (i32, i32, i32) {
    %c0_i32 = arith.constant 0 : i32
    %c0_i32_0 = arith.constant 0 : i32
    return %arg0, %arg1, %c0_i32 : i32, i32, i32
  }
  func.func @transform_2(%arg0: i32, %arg1: i32) -> (i32, i32, i32) {
    %c0_i32 = arith.constant 0 : i32
    %c0_i32_0 = arith.constant 0 : i32
    return %arg0, %arg1, %c0_i32 : i32, i32, i32
  }
  func.func @transform_3(%arg0: i32, %arg1: i32) -> (i32, i32, i32) {
    %c0_i32 = arith.constant 0 : i32
    %c0_i32_0 = arith.constant 0 : i32
    return %arg0, %arg1, %c0_i32 : i32, i32, i32
  }
  func.func @transform_4(%arg0: i32, %arg1: i32) -> (i32, i32, i32) {
    %c0_i32 = arith.constant 0 : i32
    %c0_i32_0 = arith.constant 0 : i32
    return %arg0, %arg1, %c0_i32 : i32, i32, i32
  }
  func.func @transform_5(%arg0: i32, %arg1: i32) -> (i32, i32, i32) {
    %c0_i32 = arith.constant 0 : i32
    %c0_i32_0 = arith.constant 0 : i32
    return %arg0, %arg1, %c0_i32 : i32, i32, i32
  }
  func.func @transform_6(%arg0: i32, %arg1: i32) -> (i32, i32, i32) {
    %c0_i32 = arith.constant 0 : i32
    %c0_i32_0 = arith.constant 0 : i32
    return %arg0, %arg1, %c0_i32 : i32, i32, i32
  }
  func.func @transform_7(%arg0: i32, %arg1: i32) -> (i32, i32, i32) {
    %c0_i32 = arith.constant 0 : i32
    %c0_i32_0 = arith.constant 0 : i32
    %c0_i32_1 = arith.constant 0 : i32
    return %arg0, %c0_i32, %c0_i32_0 : i32, i32, i32
  }
}

</mosaic_0001>

<bundles_post_ra>
// kernel: maploss_v2.1
= control target key start
LH: loop header
LB: loop body
LE: loop exit
PB: predicated region body
PF: predicated region fallthrough
CT: control target
= control target key end

     0   :  { %s1551_s0 = inlined_call_operand.hbm [shape: f32[2,16,16], index: 0, kind: input, shape index: {}]   ;;  %s1552_s1 = inlined_call_operand.hbm [shape: f32[2,16,16], index: 1, kind: input, shape index: {}]   ;;  %s1553_s2 = inlined_call_operand.hbm [shape: f32[2,16,16], index: 2, kind: input, shape index: {}]   ;;  %s1554_s3 = inlined_call_operand.hbm [shape: f32[2,16,16], index: 3, kind: input, shape index: {}]   ;;  %s1555_s4 = inlined_call_operand.hbm [shape: f32[2,16,16], index: 4, kind: input, shape index: {}]   ;;  %s1556_s5 = inlined_call_operand.vmem [shape: f32[2,16,16], index: 5, kind: output, shape index: {0}]   ;;  %s1557_s6 = inlined_call_operand.vmem [shape: f32[2,16,16], index: 6, kind: output, shape index: {1}]   ;;  %s1558_s7 = inlined_call_operand.vmem [shape: f32[2,4,128], index: 7, kind: output, shape index: {2}]  }
   0x1   :  { %1563 = sst [smem:[#allocation20_spill]] %s1551_s0 }
   0x2   :  { %1564 = sst [smem:[#allocation21_spill]] %s1552_s1 }
   0x3   :  { %1565 = sst [smem:[#allocation22_spill]] %s1554_s3 }
   0x4   :  { %13 = vsyncpa [#allocation7], 0 }
   0x5   :  { %15 = vsyncpa [#allocation7 + $0x1], 0 }
   0x6   :  { %16 = vsyncpa [#allocation9], 0 }
   0x7   :  { %18 = vsyncpa [#allocation9 + $0x1], 0 }
   0x8   :  { %19 = vsyncpa [#allocation12], 0 }
   0x9   :  { %21 = vsyncpa [#allocation12 + $0x1], 0  ;;  %s1334_s24 = smov 0   ;;  %s1336_s25 = smov 0  }
   0xa   :  { %s1338_s26 = smov 0   ;;  %s1340_s27 = smov 0  }
   0xb   :  { %s1342_s28 = smov 0   ;;  %s1344_s29 = smov 0  }
   0xc LB: > { %1566 = sst [smem:[#allocation17_spill]] %s1285_s28  ;;  %s1559_s30 = sadd.s32 4294967295, %s1289_s29   ;;  %s1289_s29 = sphi %s1344_s29, %s27_s29   ;;  %s1285_s28 = sphi %s1342_s28, %s1579_s28   ;;  %s1281_s27 = sphi %s1340_s27, %s1583_s27   ;;  %s1277_s26 = sphi %s1338_s26, %s1582_s26   ;;  %s1273_s25 = sphi %s1336_s25, %s1581_s25   ;;  %s1269_s24 = sphi %s1334_s24, %s1580_s24  }
   0xd   : > { %s39_s8 = sadd.s32 1, %s1285_s28  ;;  %s48_s9 = sadd.s32 1, %s1277_s26 }
   0xe   : > { %p41_p0 = scmp.ge.s32.totalorder %s39_s8, 2  ;;  %p55_p1 = scmp.ne.s32.totalorder %s1277_s26, %s1273_s25 }
   0xf   : > { %p56_p2 = scmp.eq.s32.totalorder %s1289_s29, 0  ;;  %p61_p4 = scmp.ne.s32.totalorder %s1273_s25, %s1269_s24 }
  0x10   : > { %s1585_s8 = smov (%p41_p0, %s39_s8), 0  ;;  %p62_p5 = scmp.eq.s32.totalorder %s1559_s30, 0 }
  0x11   : > { %1567 = sst [smem:[#allocation18_spill]] %s1585_s8  ;;  %p57_p3 = por %p56_p2, %p55_p1 }
  0x12   : > { %s43_s10 = ssub.s32 %s1285_s28, %s1585_s8  ;;  %p1375_p7 = por %p62_p5, %p61_p4 }
  0x13   : > { %p46_p6 = scmp.eq.s32.totalorder %s43_s10, 0  ;;  %p1029_p8 = scmp.lt.s32.totalorder %s1289_s29, 2 }
  0x14   : > { %s1560_s13 = sand.u32 1, %s1277_s26   ;;  %s1385_s14 = sshll.u32 %s1285_s28, 4 }
  0x15   : > { %s1381_s12 = scalar_select %p46_p6, %s1277_s26, %s48_s9  }
  0x16   : > { %s1389_s15 = sshll.u32 %s1560_s13, 4  ;;  %p1391_p9 = pnand %p1029_p8, %p57_p3 }
  0x17   : > { %1569 = sst [smem:[#allocation19_spill]] %s1381_s12  ;;  %s303_s17 = sand.u32 1, %s1289_s29  }
  0x18   : > { %s1571_s1 = sld [smem:[#allocation21_spill]]  ;;  %s307_s21 = scalar_lea.vmem [#allocation8], %s1389_s15 }
  0x19   : > { %s317_s22 = sshll.u32 %s307_s21, 4  ;;  %p979_p10 = scmp.ge.s32.totalorder %s1289_s29, 1  ;;  %s318_s22 = int_to_ptr.vmem [resolvable:$true] %s317_s22 }
  0x1a   : > { %s1402_s24 = scalar_lea.sflag [#allocation9], %s303_s17  ;;  %s1291_s9 = smov 128  }
  0x1b   : > { %s1292_s10 = smov 8   ;;  %p397_p11 = scmp.lt.s32.totalorder %s1289_s29, 3 }
  0x1c   : > { %s1572_s3 = sld [smem:[#allocation22_spill]]  ;;  %s355_s13 = scalar_lea.vmem [#allocation11], %s1389_s15 }
  0x1d   : > { %p1415_p12 = pnand %p979_p10, %p397_p11  ;;  %s352_s8 = scalar_lea.sflag [#allocation12], %s303_s17 }
  0x1e   : > { %s314_s20 = scalar_lea.hbm %s1571_s1, %s1385_s14  ;;  %s365_s1 = sshll.u32 %s355_s13, 4  ;;  %s366_s1 = int_to_ptr.vmem [resolvable:$true] %s365_s1 }
  0x1f   : > { %s315_s23 = sshll.u32 %s314_s20, 4  ;;  %s1574_s0 = sld [smem:[#allocation20_spill]]  ;;  %s316_s23 = int_to_ptr.hbm [resolvable:$true] %s315_s23 }
  0x20   : > { %1019 = dma.hbm_to_vmem [thread:$0]  (!%p1391_p9), %s316_s23, 256, %s318_s22, %s1402_s24, %s1291_s9, %s1291_s9, %s1292_s10  }
  0x21   : > { %s1575_s13 = sand.u32 1, %s1277_s26   ;;  %s338_s22 = scalar_lea.hbm %s1553_s2, %s1385_s14 }
  0x22   : > { %s362_s20 = scalar_lea.hbm %s1572_s3, %s1385_s14  ;;  %s280_s17 = scalar_lea.sflag [#allocation7], %s1575_s13 }
  0x23   : > { %s363_s30 = sshll.u32 %s362_s20, 4  ;;  %s283_s20 = scalar_lea.vmem [#allocation6], %s1389_s15  ;;  %s364_s30 = int_to_ptr.hbm [resolvable:$true] %s363_s30 }
  0x24   : > { %1025 = dma.hbm_to_vmem [thread:$0]  (!%p1391_p9), %s364_s30, 256, %s366_s1, %s352_s8, %s1291_s9, %s1291_s9, %s1292_s10  }
  0x25   : > { %s290_s18 = scalar_lea.hbm %s1574_s0, %s1385_s14  ;;  %s293_s3 = sshll.u32 %s283_s20, 4  ;;  %s294_s3 = int_to_ptr.vmem [resolvable:$true] %s293_s3 }
  0x26   : > { %s291_s19 = sshll.u32 %s290_s18, 4  ;;  %s339_s23 = sshll.u32 %s338_s22, 4  ;;  %s292_s19 = int_to_ptr.hbm [resolvable:$true] %s291_s19  ;;  %s340_s23 = int_to_ptr.hbm [resolvable:$true] %s339_s23 }
  0x27   : > { %1016 = dma.hbm_to_vmem [thread:$0]  (!%p1391_p9), %s292_s19, 256, %s294_s3, %s280_s17, %s1291_s9, %s1291_s9, %s1292_s10  }
  0x28   : > { %s331_s0 = scalar_lea.vmem [#allocation10], %s1389_s15  ;;  %s386_s28 = scalar_lea.hbm %s1555_s4, %s1385_s14 }
  0x29   : > { %s341_s18 = sshll.u32 %s331_s0, 4  ;;  %s387_s12 = sshll.u32 %s386_s28, 4  ;;  %s342_s18 = int_to_ptr.vmem [resolvable:$true] %s341_s18  ;;  %s388_s12 = int_to_ptr.hbm [resolvable:$true] %s387_s12 }
  0x2a   : > { %1022 = dma.hbm_to_vmem [thread:$0]  (!%p1391_p9), %s340_s23, 256, %s342_s18, %s1402_s24, %s1291_s9, %s1291_s9, %s1292_s10  }
  0x2b   : > { %s379_s3 = scalar_lea.vmem [#allocation13], %s1389_s15  ;;  %401 = sbr.rel (%p1415_p12) target bundleno = 225 (0xe1), region = 40 }
  0x2c   : > { %s389_s19 = sshll.u32 %s379_s3, 4  ;;  %s403_s0 = sand.u32 (!%p1415_p12), 1, %s1273_s25   ;;  %s390_s19 = int_to_ptr.vmem [resolvable:$true] %s389_s19 }
  0x2d   : > { %1028 = dma.hbm_to_vmem [thread:$0]  (!%p1391_p9), %s388_s12, 256, %s390_s19, %s352_s8, %s1291_s9, %s1291_s9, %s1292_s10  }
  0x2e   : > { %s1461_s24 = sshll.u32 (!%p1415_p12), %s403_s0, 4  ;;  %s404_s14 = scalar_lea.sflag (!%p1415_p12), [#allocation7], %s403_s0 }
  0x2f   : > { %s407_s28 = scalar_lea.vmem (!%p1415_p12), [#allocation6], %s1461_s24 }
  0x30   : > { %1256 = dma.done.wait (%p1375_p7), %s404_s14, 256  }
  0x31   : > { %1258 = vsyncadd (%p1375_p7), %s404_s14, 4294967040  ;;  %s1576_s15 = sadd.s32 4294967295, %s1289_s29   ;;  %s417_s16 = scalar_lea.vmem [#allocation8], %s1461_s24 }
  0x32   : > { %s413_s8 = sand.u32 1, %s1576_s15  }
  0x33   : > { %s414_s12 = scalar_lea.sflag [#allocation9], %s413_s8 }
  0x34   : > { %1260 = dma.done.wait (%p1375_p7), %s414_s12, 512  }
  0x35   : > { %1262 = vsyncadd (%p1375_p7), %s414_s12, 4294966784  ;;  %s427_s9 = scalar_lea.vmem [#allocation10], %s1461_s24  ;;  %s434_s10 = scalar_lea.sflag [#allocation12], %s413_s8 }
  0x36   : > { %s437_s21 = scalar_lea.vmem [#allocation11], %s1461_s24 }
  0x37   : > { %1264 = dma.done.wait (%p1375_p7), %s434_s10, 512  }
  0x38   : > { %1266 = vsyncadd (%p1375_p7), %s434_s10, 4294966784  ;;  %vm549_vm0 = vcmask 122880   ;;  %v1293_v0 = vmov 0.0   ;;  %v556_v1 = vld [vmem:[%s417_s16] sm:$0xff]  ;;  %v557_v2 = vld [vmem:[%s417_s16 + $0x8] sm:$0xff]  ;;  %vm596_vm2 = vcmask 130048  }
  0x39   : > { %552 = vst.msk [vmem:[#allocation4] sm:$0x1] %vm549_vm0, %v1293_v0  ;;  %v564_v3 = vld [vmem:[%s437_s21] sm:$0xff]  ;;  %v565_v4 = vld [vmem:[%s437_s21 + $0x8] sm:$0xff]  ;;  %vm582_vm1 = vcmp.gt.f32.partialorder %v556_v1, 0.1 }
  0x3a   : > { %550 = vst.msk [vmem:[#allocation2] sm:$0x1] %vm549_vm0, %v1293_v0  ;;  %s447_s11 = scalar_lea.vmem [#allocation13], %s1461_s24  ;;  %v566_v7 = vsub.f32 %v564_v3, %v556_v1  ;;  %v567_v8 = vsub.f32 %v565_v4, %v557_v2  ;;  %vm583_vm3 = vcmp.gt.f32.partialorder %v557_v2, 0.1  ;;  %v992_v9 = vsel %vm582_vm1, 1.0, %v1293_v0 }
  0x3b   : > { %551 = vst.msk [vmem:[#allocation3] sm:$0x1] %vm549_vm0, %v1293_v0  ;;  %v558_v5 = vld [vmem:[%s447_s11] sm:$0xff]  ;;  %v559_v6 = vld [vmem:[%s447_s11 + $0x8] sm:$0xff]  ;;  %v993_v11 = vsel %vm583_vm3, 1.0, %v1293_v0  ;;  %v592_v12 = vsub.f32 1.0, %v992_v9 }
  0x3c   : > { %553 = vst.msk [vmem:[#allocation5] sm:$0x1] %vm549_vm0, %v1293_v0  ;;  %v554_v10 = vld [vmem:[%s407_s28] sm:$0xff]  ;;  %v555_v13 = vld [vmem:[%s407_s28 + $0x8] sm:$0xff]  ;;  %v643_v16 = vsel %vm596_vm2, %v992_v9, 0.0  ;;  %v572_v17 = vmul.f32 %v566_v7, %v566_v7  ;;  %v573_v18 = vmul.f32 %v567_v8, %v567_v8  ;;  %v593_v19 = vsub.f32 1.0, %v993_v11 }
  0x3d   : > { %v560_v14 = vld [vmem:[%s427_s9] sm:$0xff]  ;;  %v561_v15 = vld [vmem:[%s427_s9 + $0x8] sm:$0xff]  ;;  %vm576_vm4 = vcmp.gt.f32.partialorder %v554_v10, 0.1  ;;  %vm577_vm5 = vcmp.gt.f32.partialorder %v555_v13, 0.1 }
  0x3e   : > { %v562_v20 = vsub.f32 %v560_v14, %v554_v10  ;;  %v563_v21 = vsub.f32 %v561_v15, %v555_v13  ;;  %v644_v22 = vsel %vm596_vm2, %v993_v11, 0.0  ;;  %v574_v23 = vmul.f32 %v572_v17, %v558_v5  ;;  %p522_p13 = scmp.lt.s32.totalorder %s1281_s27, 1 }
  0x3f   : > { %v575_v24 = vmul.f32 %v573_v18, %v559_v6  ;;  %v990_v26 = vsel %vm576_vm4, 1.0, %v1293_v0  ;;  %v991_v28 = vsel %vm577_vm5, 1.0, %v1293_v0  ;;  %v645_v37 = vadd.f32 %v644_v22, %v643_v16 }
  0x40   : > { %v568_v25 = vmul.f32 %v562_v20, %v562_v20  ;;  %v569_v27 = vmul.f32 %v563_v21, %v563_v21  ;;  %v588_v29 = vsub.f32 1.0, %v990_v26  ;;  %v617_v30 = vsel %vm596_vm2, %v990_v26, 0.0  ;;  %v628_v10 = vld [vmem:[#allocation4] sm:$0x1]  ;;  %s1587_s27 = smov (!%p522_p13, %s1281_s27), 1 }
  0x41   : > { %v1493_v31 = vmul.f32 %v592_v12, %v574_v23  ;;  %v1495_v32 = vmul.f32 %v593_v19, %v575_v24  ;;  %v589_v34 = vsub.f32 1.0, %v991_v28  ;;  %v618_v36 = vsel %vm596_vm2, %v991_v28, 0.0  ;;  %v601_v16 = vld [vmem:[#allocation2] sm:$0x1]  ;;  %s1001_s17 = sshll.u32 %s1587_s27, 4  ;;  %s989_s13 = sshll.u32 %s1587_s27, 2 }
  0x42   : > { %v570_v33 = vmul.f32 %v568_v25, %v558_v5  ;;  %v571_v35 = vmul.f32 %v569_v27, %v559_v6  ;;  %v619_v41 = vadd.f32 %v618_v36, %v617_v30  ;;  %v646_v43 = vrot.slane %v645_v37, 4  ;;  %v616_v4 = vld [vmem:[#allocation3] sm:$0x1]  ;;  %s529_s22 = scalar_lea.vmem %s1556_s5, %s1001_s17  ;;  %s539_s20 = scalar_lea.vmem %s1557_s6, %s1001_s17 }
  0x43   : > { %v629_v38 = vsub.f32 %v574_v23, %v1493_v31  ;;  %v630_v39 = vsub.f32 %v575_v24, %v1495_v32  ;;  %v642_v1 = vld [vmem:[#allocation5] sm:$0x1]  ;;  %599 = vst.msk [vmem:[%s539_s20] sm:$0xff] %vm596_vm2, %v1493_v31  ;;  %s544_s0 = scalar_lea.vmem %s1558_s7, %s989_s13 }
  0x44   : > { %v590_v40 = vmul.f32 %v588_v29, %v570_v33  ;;  %v591_v42 = vmul.f32 %v589_v34, %v571_v35  ;;  %v620_v46 = vrot.slane %v619_v41, 4  ;;  %v647_v49 = vadd.f32 %v646_v43, %v645_v37  ;;  %600 = vst.msk [vmem:[%s539_s20 + $0x8] sm:$0xff] %vm596_vm2, %v1495_v32 }
  0x45   : > { %v631_v44 = vsel %vm596_vm2, %v629_v38, 0.0  ;;  %v632_v45 = vsel %vm596_vm2, %v630_v39, 0.0  ;;  %v657_v29 = vlaneseq }
  0x46   : > { %v602_v47 = vsub.f32 %v570_v33, %v590_v40  ;;  %v633_v48 = vadd.f32 %v632_v45, %v631_v44  ;;  %v603_v50 = vsub.f32 %v571_v35, %v591_v42  ;;  %v621_v51 = vadd.f32 %v620_v46, %v619_v41  ;;  %597 = vst.msk [vmem:[%s529_s22] sm:$0xff] %vm596_vm2, %v590_v40 }
  0x47   : > { %v648_v54 = vrot.slane %v647_v49, 2  ;;  %598 = vst.msk [vmem:[%s529_s22 + $0x8] sm:$0xff] %vm596_vm2, %v591_v42  ;;  %v658_v30 = vshrl.u32 %v657_v29, 7 }
  0x48   : > { %v604_v52 = vsel %vm596_vm2, %v602_v47, 0.0  ;;  %v634_v53 = vrot.slane %v633_v48, 4  ;;  %v605_v55 = vsel %vm596_vm2, %v603_v50, 0.0  ;;  %v622_v56 = vrot.slane %v621_v51, 2 }
  0x49   : > { %v606_v57 = vadd.f32 %v605_v55, %v604_v52  ;;  %v649_v59 = vadd.f32 %v648_v54, %v647_v49  ;;  %vm671_vm6 = vcmp.eq.s32.totalorder %v658_v30, 2  ;;  %vm665_vm7 = vcmp.eq.s32.totalorder %v658_v30, 1 }
  0x4a   : > { %v635_v58 = vadd.f32 %v634_v53, %v633_v48  ;;  %v623_v60 = vadd.f32 %v622_v56, %v621_v51  ;;  %vm659_vm8 = vcmp.eq.s32.totalorder %v658_v30, 0 }
  0x4b   : > { %v607_v61 = vrot.slane %v606_v57, 4  ;;  %v650_v63 = vrot.slane %v649_v59, 1 }
  0x4c   : > { %v636_v62 = vrot.slane %v635_v58, 2  ;;  %v624_v0 = vrot.slane %v623_v60, 1 }
  0x4d   : > { %v608_v2 = vadd.f32 %v607_v61, %v606_v57  ;;  %v651_v5 = vadd.f32 %v650_v63, %v649_v59 }
  0x4e   : > { %v637_v3 = vadd.f32 %v636_v62, %v635_v58  ;;  %v625_v6 = vadd.f32 %v624_v0, %v623_v60 }
  0x4f   : > { %v609_v7 = vrot.slane %v608_v2, 2  ;;  %v652_v9 = vadd.f32 %v651_v5, %v642_v1 }
  0x50   : > { %v638_v8 = vrot.slane %v637_v3, 1  ;;  %v626_v11 = vadd.f32 %v625_v6, %v616_v4 }
  0x51   : > { %v610_v12 = vadd.f32 %v609_v7, %v608_v2  ;;  %653 = vst.msk [vmem:[#allocation5] sm:$0x1] %vm549_vm0, %v652_v9 }
  0x52   : > { %v639_v13 = vadd.f32 %v638_v8, %v637_v3  ;;  %627 = vst.msk [vmem:[#allocation3] sm:$0x1] %vm549_vm0, %v626_v11 }
  0x53   : > { %v611_v14 = vrot.slane %v610_v12, 1 }
  0x54   : > { %v640_v15 = vadd.f32 %v639_v13, %v628_v10 }
  0x55   : > { %v612_v17 = vadd.f32 %v611_v14, %v610_v12 }
  0x56   : > { %641 = vst.msk [vmem:[#allocation4] sm:$0x1] %vm549_vm0, %v640_v15 }
  0x57   : > { %v613_v18 = vadd.f32 %v612_v17, %v601_v16 }
  0x58   : > { %v677_v24 = vld [vmem:[#allocation5] sm:$0x1] }
  0x59   : > { %615 = vst.msk [vmem:[#allocation2] sm:$0x1] %vm549_vm0, %v613_v18  ;;  %v666_v19 = vld [vmem:[#allocation3] sm:$0x1]  ;;  %v678_v26 = vsel %vm549_vm0, %v677_v24, 0.0 }
  0x5a   : > { %v667_v20 = vsel %vm549_vm0, %v666_v19, 0.0 }
  0x5b   : > { %668 = vadd.xlane.f32.xlu1 %v667_v20 }
  0x5d   : > { %v672_v21 = vld [vmem:[#allocation4] sm:$0x1] }
  0x5e   : > { %v673_v22 = vsel %vm549_vm0, %v672_v21, 0.0 }
  0x5f   : > { %674 = vadd.xlane.f32.xlu0 %v673_v22 }
  0x60   : > { %v660_v23 = vld [vmem:[#allocation2] sm:$0x1] }
  0x61   : > { %v661_v25 = vsel %vm549_vm0, %v660_v23, 0.0 }
  0x63   : > { %662 = vadd.xlane.f32.xlu1 %v661_v25 }
  0x67   : > { %679 = vadd.xlane.f32.xlu0 %v678_v26 }
  0xce   : > { %v669_v27 = vpop.xlane.xlu1 %668 }
  0xcf   : > { %v670_v31 = vperm.slane %v669_v27, 0 }
  0xd2   : > { %v675_v28 = vpop.xlane.xlu0 %674 }
  0xd3   : > { %v676_v35 = vperm.slane %v675_v28, 0 }
  0xd6   : > { %v663_v33 = vpop.xlane.xlu1 %662 }
  0xd7   : > { %v664_v37 = vperm.slane %v663_v33, 0 }
  0xda   : > { %v680_v34 = vpop.xlane.xlu0 %679 }
  0xdb   : > { %v681_v36 = vperm.slane %v680_v34, 0 }
  0xdd   : > { %v682_v38 = vsel %vm671_vm6, %v676_v35, %v681_v36 }
  0xde   : > { %v683_v32 = vsel %vm665_vm7, %v670_v31, %v682_v38 }
  0xdf   : > { %v684_v39 = vsel %vm659_vm8, %v664_v37, %v683_v32 }
  0xe0   : > { %685 = vst [vmem:[%s544_s0] sm:$0xf] %v684_v39 }
  0xe1 PF: > { %s27_s29 = sadd.s32 1, %s1289_s29   ;;  %s1577_s27 = sld [smem:[#allocation19_spill]] }
  0xe2   : > { %p24_p0 = scmp.ge.s32.totalorder %s27_s29, 4   ;;  %s1578_s14 = sld [smem:[#allocation17_spill]] }
  0xe3   : > { %s1579_s28 = sld [smem:[#allocation18_spill]]  ;;  %s1580_s24 = smov %s1273_s25 }
  0xe4   : > { %s1581_s25 = smov %s1277_s26  ;;  %26 = sbr.rel (!%p24_p0) target bundleno = 12 (0xc), region = 160 }
  0xe7   : > { %s1582_s26 = smov %s1577_s27 }
  0xe8   : > { %s1583_s27 = smov %s1578_s14 }
  0xe9   :  { %755 = vsyncpa [#allocation7], 1 }
  0xea   :  { %757 = vsyncpa [#allocation7 + $0x1], 1 }
  0xeb   :  { %758 = vsyncpa [#allocation9], 1 }
  0xec   :  { %760 = vsyncpa [#allocation9 + $0x1], 1 }
  0xed   :  { %761 = vsyncpa [#allocation12], 1 }
  0xee   :  { %763 = vsyncpa [#allocation12 + $0x1], 1 }

</bundles_post_ra>
